<compile_context>
chip_gen: v7x
topology: tpu7x:2x2x1
jax: 0.10.0
libtpu: 0.0.40
codegen_flags: <defaults>
</compile_context>

<pallas_src>
import functools

import jax
import jax.numpy as jnp
from jax.experimental import pallas as pl
from jax.experimental.pallas import tpu as pltpu

LOG_SIG_MAX = 2.0
LOG_SIG_MIN = -20.0


def _round_up(x, m):
    return ((x + m - 1) // m) * m


def _policy_kernel(x_ref, w1_ref, b1_ref, w2_ref, b2_ref, wh_ref, bh_ref, out_ref,
                   *, num_actions):
    """One batch tile: two hidden layers + fused, lane-padded (mean || log_std) head.

    x arrives f32 and is cast to bf16 here (VPU cast hides under the MXU work).
    bf16 matmul operands, f32 accumulation; bias / ReLU / clamp in f32.
    Output is a single lane-dense (tile_b, out_pad) f32 slab; columns [0, A) are
    mean (passthrough), [A, out_pad) are clamped (cols >= 2A are zero-weight
    padding and are discarded by the wrapper).
    """
    x = x_ref[...].astype(jnp.bfloat16)                                  # (tb, In)

    h1 = jnp.dot(x, w1_ref[...], preferred_element_type=jnp.float32) + b1_ref[...]
    h1 = jnp.maximum(h1, 0.0).astype(jnp.bfloat16)                       # ReLU (VPU)

    h2 = jnp.dot(h1, w2_ref[...], preferred_element_type=jnp.float32) + b2_ref[...]
    h2 = jnp.maximum(h2, 0.0).astype(jnp.bfloat16)                       # ReLU (VPU)

    y = jnp.dot(h2, wh_ref[...], preferred_element_type=jnp.float32) + bh_ref[...]
    col = jax.lax.broadcasted_iota(jnp.int32, y.shape, dimension=1)
    clipped = jnp.clip(y, LOG_SIG_MIN, LOG_SIG_MAX)
    # Single full-width store: mean columns pass through, the rest are clamped.
    out_ref[...] = jnp.where(col < num_actions, y, clipped)


@functools.partial(jax.jit, static_argnames=("num_actions", "batch_tile"))
def _forward_impl(state, w1, b1, w2, b2, wh, bh, *, num_actions, batch_tile):
    B, num_inputs = state.shape
    hidden_dim = w1.shape[1]
    out_pad = wh.shape[1]                       # lane-dense padded head width

    # Batch tiling: big tiles (fewer grid steps), but always >= 2 steps when the
    # batch allows it so v7x's second TensorCore gets work.
    tb = min(batch_tile, _round_up(B, 8))
    if B >= 16:
        tb = min(tb, _round_up((B + 1) // 2, 8))
    grid = (pl.cdiv(B, tb),)

    flops = 2 * B * (num_inputs * hidden_dim
                     + hidden_dim * hidden_dim
                     + hidden_dim * out_pad)
    bytes_accessed = (state.size * 4
                      + (w1.size + w2.size + wh.size) * 2
                      + (b1.size + b2.size + bh.size) * 4
                      + B * out_pad * 4)

    const = lambda i: (0, 0)   # weights/biases: constant block index -> VMEM-resident
    fused = pl.pallas_call(
        functools.partial(_policy_kernel, num_actions=num_actions),
        out_shape=jax.ShapeDtypeStruct((B, out_pad), jnp.float32),
        grid=grid,
        in_specs=[
            pl.BlockSpec((tb, num_inputs), lambda i: (i, 0)),            # x: batch-tiled
            pl.BlockSpec((num_inputs, hidden_dim), const),               # W1 (bf16)
            pl.BlockSpec((1, hidden_dim), const),                        # b1 (f32)
            pl.BlockSpec((hidden_dim, hidden_dim), const),               # W2 (bf16)
            pl.BlockSpec((1, hidden_dim), const),                        # b2 (f32)
            pl.BlockSpec((hidden_dim, out_pad), const),                  # Wm||Ws||0 (bf16)
            pl.BlockSpec((1, out_pad), const),                           # bm||bs||0 (f32)
        ],
        out_specs=pl.BlockSpec((tb, out_pad), lambda i: (i, 0)),
        compiler_params=pltpu.CompilerParams(
            dimension_semantics=("parallel",),                           # megacore on v7x
            vmem_limit_bytes=32 * 1024 * 1024),                          # > v5e 16 MiB default
        cost_estimate=pl.CostEstimate(
            flops=flops, transcendentals=0, bytes_accessed=bytes_accessed),
    )(state, w1, b1, w2, b2, wh, bh)

    mean = fused[:, :num_actions]
    log_std = fused[:, num_actions:2 * num_actions]
    return mean, log_std


def gaussian_policy_forward(state, prepared, *, batch_tile=1024):
    """state: (B, num_inputs) f32. prepared: output of prepare_params().

    Returns (mean, log_std), both (B, num_actions) f32.
    """
    return _forward_impl(
        state, prepared["w1"], prepared["b1"], prepared["w2"], prepared["b2"],
        prepared["wh"], prepared["bh"],
        num_actions=prepared["num_actions"], batch_tile=batch_tile)


def init_params(key, num_inputs, num_actions, hidden_dim):
    """Deterministic init mirroring weights_init_: xavier_uniform weights, zero biases."""
    def xavier_uniform(k, fan_in, fan_out):
        limit = jnp.sqrt(6.0 / (fan_in + fan_out))
        return jax.random.uniform(k, (fan_in, fan_out), jnp.float32, -limit, limit)

    k1, k2, k3, k4 = jax.random.split(key, 4)
    return {
        "w1": xavier_uniform(k1, num_inputs, hidden_dim),
        "b1": jnp.zeros((1, hidden_dim), jnp.float32),
        "w2": xavier_uniform(k2, hidden_dim, hidden_dim),
        "b2": jnp.zeros((1, hidden_dim), jnp.float32),
        "wm": xavier_uniform(k3, hidden_dim, num_actions),
        "bm": jnp.zeros((1, num_actions), jnp.float32),
        "ws": xavier_uniform(k4, hidden_dim, num_actions),
        "bs": jnp.zeros((1, num_actions), jnp.float32),
    }


def prepare_params(params):
    """Precompute (once, outside the hot path) the fused bf16 kernel weights:
    W1/W2 cast to bf16, and the mean/log_std heads fused and zero-padded to a
    lane-dense multiple of 128 output columns."""
    num_actions = params["wm"].shape[1]
    hidden_dim = params["w1"].shape[1]
    out_pad = _round_up(2 * num_actions, 128)

    wh = jnp.zeros((hidden_dim, out_pad), jnp.float32)
    wh = wh.at[:, :num_actions].set(params["wm"])
    wh = wh.at[:, num_actions:2 * num_actions].set(params["ws"])
    bh = jnp.zeros((1, out_pad), jnp.float32)
    bh = bh.at[:, :num_actions].set(params["bm"])
    bh = bh.at[:, num_actions:2 * num_actions].set(params["bs"])

    return {
        "w1": params["w1"].astype(jnp.bfloat16),
        "b1": params["b1"],
        "w2": params["w2"].astype(jnp.bfloat16),
        "b2": params["b2"],
        "wh": wh.astype(jnp.bfloat16),
        "bh": bh,
        "num_actions": int(num_actions),
    }


def _reference_forward_f32(state, params):
    """Pure-f32 reference (the original module's numerics)."""
    h1 = jax.nn.relu(state @ params["w1"] + params["b1"])
    h2 = jax.nn.relu(h1 @ params["w2"] + params["b2"])
    mean = h2 @ params["wm"] + params["bm"]
    log_std = jnp.clip(h2 @ params["ws"] + params["bs"], LOG_SIG_MIN, LOG_SIG_MAX)
    return mean, log_std


def _reference_forward_bf16(state, params):
    """Reference with the same bf16-operand / f32-accumulate numerics as the kernel."""
    f = lambda a: a.astype(jnp.bfloat16)
    h1 = jnp.maximum(
        jnp.dot(f(state), f(params["w1"]), preferred_element_type=jnp.float32)
        + params["b1"], 0.0)
    h2 = jnp.maximum(
        jnp.dot(f(h1), f(params["w2"]), preferred_element_type=jnp.float32)
        + params["b2"], 0.0)
    mean = (jnp.dot(f(h2), f(params["wm"]), preferred_element_type=jnp.float32)
            + params["bm"])
    log_std = (jnp.dot(f(h2), f(params["ws"]), preferred_element_type=jnp.float32)
               + params["bs"])
    return mean, jnp.clip(log_std, LOG_SIG_MIN, LOG_SIG_MAX)


# TODO(synk): GaussianPolicy.sample() (Normal.rsample / tanh / log_prob) is not part of
# forward() and is not translated here.

if __name__ == "__main__":
    key = jax.random.PRNGKey(0)
    k_param, k_state, k_state2 = jax.random.split(key, 3)

    batch = 8
    num_inputs = 16
    num_actions = 8
    hidden_dim = 32

    params = init_params(k_param, num_inputs, num_actions, hidden_dim)
    prepared = prepare_params(params)   # fused bf16 weights, built once

    # scale state so the clamp path is exercised
    state = 3.0 * jax.random.normal(k_state, (batch, num_inputs), jnp.float32)

    mean, log_std = gaussian_policy_forward(state, prepared)
    jax.block_until_ready((mean, log_std))

    assert mean.shape == (batch, num_actions)
    assert log_std.shape == (batch, num_actions)

    # Tight check vs a reference using identical bf16-operand numerics.
    ref_mean, ref_log_std = _reference_forward_bf16(state, params)
    assert jnp.allclose(mean, ref_mean, atol=1e-3, rtol=1e-3)
    assert jnp.allclose(log_std, ref_log_std, atol=1e-3, rtol=1e-3)

    # Loose sanity check vs the original f32 module numerics.
    f32_mean, f32_log_std = _reference_forward_f32(state, params)
    assert jnp.allclose(mean, f32_mean, atol=0.5, rtol=0.1)
    assert jnp.allclose(log_std, f32_log_std, atol=0.5, rtol=0.1)
    assert float(log_std.max()) <= LOG_SIG_MAX and float(log_std.min()) >= LOG_SIG_MIN

    # Larger, non-tile-aligned batch exercises the multi-step grid (>=2 steps,
    # v7x megacore path) and the masked partial final block (no explicit pad).
    big_batch = 300
    state_big = 3.0 * jax.random.normal(k_state2, (big_batch, num_inputs), jnp.float32)
    mean_b, log_std_b = gaussian_policy_forward(state_big, prepared, batch_tile=128)
    jax.block_until_ready((mean_b, log_std_b))
    ref_mean_b, ref_log_std_b = _reference_forward_bf16(state_big, params)
    assert mean_b.shape == (big_batch, num_actions)
    assert log_std_b.shape == (big_batch, num_actions)
    assert jnp.allclose(mean_b, ref_mean_b, atol=1e-3, rtol=1e-3)
    assert jnp.allclose(log_std_b, ref_log_std_b, atol=1e-3, rtol=1e-3)

    print("KERNEL_OK")
</pallas_src>

<mosaic_0001>
module attributes {stable_mosaic.version = 11 : i64} {
  func.func @_policy_kernel(%arg0: i32, %arg1: memref<8x16xf32, #tpu.memory_space<vmem>>, %arg2: memref<16x32xbf16, #tpu.memory_space<vmem>>, %arg3: memref<1x32xf32, #tpu.memory_space<vmem>>, %arg4: memref<32x32xbf16, #tpu.memory_space<vmem>>, %arg5: memref<1x32xf32, #tpu.memory_space<vmem>>, %arg6: memref<32x128xbf16, #tpu.memory_space<vmem>>, %arg7: memref<1x128xf32, #tpu.memory_space<vmem>>, %arg8: memref<8x128xf32, #tpu.memory_space<vmem>>) attributes {dimension_semantics = [#tpu.dimension_semantics<parallel>], iteration_bounds = array<i64: 1>, scalar_prefetch = 0 : i64, scratch_operands = 0 : i64, tpu.core_type = #tpu.core_type<tc>, window_params = [{transform_indices = @transform_0, window_bounds = array<i64: 8, 16>}, {pipeline_mode = #tpu.pipeline_mode<synchronous>, transform_indices = @transform_1, window_bounds = array<i64: 16, 32>}, {pipeline_mode = #tpu.pipeline_mode<synchronous>, transform_indices = @transform_2, window_bounds = array<i64: 1, 32>}, {pipeline_mode = #tpu.pipeline_mode<synchronous>, transform_indices = @transform_3, window_bounds = array<i64: 32, 32>}, {pipeline_mode = #tpu.pipeline_mode<synchronous>, transform_indices = @transform_4, window_bounds = array<i64: 1, 32>}, {pipeline_mode = #tpu.pipeline_mode<synchronous>, transform_indices = @transform_5, window_bounds = array<i64: 32, 128>}, {pipeline_mode = #tpu.pipeline_mode<synchronous>, transform_indices = @transform_6, window_bounds = array<i64: 1, 128>}, {transform_indices = @transform_7, window_bounds = array<i64: 8, 128>}]} {
    %c0 = arith.constant 0 : index
    %c0_0 = arith.constant 0 : index
    %0 = vector.load %arg1[%c0, %c0_0] : memref<8x16xf32, #tpu.memory_space<vmem>>, vector<8x16xf32>
    %1 = arith.truncf %0 : vector<8x16xf32> to vector<8x16xbf16>
    %c0_1 = arith.constant 0 : index
    %c0_2 = arith.constant 0 : index
    %2 = vector.load %arg2[%c0_1, %c0_2] : memref<16x32xbf16, #tpu.memory_space<vmem>>, vector<16x32xbf16>
    %cst = arith.constant dense<0.000000e+00> : vector<8x32xf32>
    %3 = tpu.matmul %1, %2, %cst {dimension_numbers = #tpu.dot_dimension_numbers<[1], [0], [0], [1], [0, 0, 1, 1], [], []>} : vector<8x16xbf16>, vector<16x32xbf16>, vector<8x32xf32> -> vector<8x32xf32>
    %c0_3 = arith.constant 0 : index
    %c0_4 = arith.constant 0 : index
    %4 = vector.load %arg3[%c0_3, %c0_4] : memref<1x32xf32, #tpu.memory_space<vmem>>, vector<1x32xf32>
    %5 = vector.broadcast %4 : vector<1x32xf32> to vector<8x32xf32>
    %6 = arith.addf %3, %5 : vector<8x32xf32>
    %cst_5 = arith.constant 0.000000e+00 : f32
    %7 = vector.broadcast %cst_5 : f32 to vector<8x32xf32>
    %8 = arith.maximumf %6, %7 : vector<8x32xf32>
    %9 = arith.truncf %8 : vector<8x32xf32> to vector<8x32xbf16>
    %c0_6 = arith.constant 0 : index
    %c0_7 = arith.constant 0 : index
    %10 = vector.load %arg4[%c0_6, %c0_7] : memref<32x32xbf16, #tpu.memory_space<vmem>>, vector<32x32xbf16>
    %cst_8 = arith.constant dense<0.000000e+00> : vector<8x32xf32>
    %11 = tpu.matmul %9, %10, %cst_8 {dimension_numbers = #tpu.dot_dimension_numbers<[1], [0], [0], [1], [0, 0, 1, 1], [], []>} : vector<8x32xbf16>, vector<32x32xbf16>, vector<8x32xf32> -> vector<8x32xf32>
    %c0_9 = arith.constant 0 : index
    %c0_10 = arith.constant 0 : index
    %12 = vector.load %arg5[%c0_9, %c0_10] : memref<1x32xf32, #tpu.memory_space<vmem>>, vector<1x32xf32>
    %13 = vector.broadcast %12 : vector<1x32xf32> to vector<8x32xf32>
    %14 = arith.addf %11, %13 : vector<8x32xf32>
    %cst_11 = arith.constant 0.000000e+00 : f32
    %15 = vector.broadcast %cst_11 : f32 to vector<8x32xf32>
    %16 = arith.maximumf %14, %15 : vector<8x32xf32>
    %17 = arith.truncf %16 : vector<8x32xf32> to vector<8x32xbf16>
    %c0_12 = arith.constant 0 : index
    %c0_13 = arith.constant 0 : index
    %18 = vector.load %arg6[%c0_12, %c0_13] : memref<32x128xbf16, #tpu.memory_space<vmem>>, vector<32x128xbf16>
    %cst_14 = arith.constant dense<0.000000e+00> : vector<8x128xf32>
    %19 = tpu.matmul %17, %18, %cst_14 {dimension_numbers = #tpu.dot_dimension_numbers<[1], [0], [0], [1], [0, 0, 1, 1], [], []>} : vector<8x32xbf16>, vector<32x128xbf16>, vector<8x128xf32> -> vector<8x128xf32>
    %c0_15 = arith.constant 0 : index
    %c0_16 = arith.constant 0 : index
    %20 = vector.load %arg7[%c0_15, %c0_16] : memref<1x128xf32, #tpu.memory_space<vmem>>, vector<1x128xf32>
    %21 = vector.broadcast %20 : vector<1x128xf32> to vector<8x128xf32>
    %22 = arith.addf %19, %21 : vector<8x128xf32>
    %23 = tpu.iota {dimensions = array<i32: 1>} : vector<8x128xi32>
    %cst_17 = arith.constant -2.000000e+01 : f32
    %cst_18 = arith.constant 2.000000e+00 : f32
    %24 = vector.broadcast %cst_17 : f32 to vector<8x128xf32>
    %25 = arith.maximumf %24, %22 : vector<8x128xf32>
    %26 = vector.broadcast %cst_18 : f32 to vector<8x128xf32>
    %27 = arith.minimumf %26, %25 : vector<8x128xf32>
    %c8_i32 = arith.constant 8 : i32
    %28 = vector.broadcast %c8_i32 : i32 to vector<8x128xi32>
    %29 = arith.cmpi slt, %23, %28 : vector<8x128xi32>
    %30 = arith.select %29, %22, %27 : vector<8x128xi1>, vector<8x128xf32>
    %c0_19 = arith.constant 0 : index
    %c0_20 = arith.constant 0 : index
    %31 = vector.load %arg8[%c0_19, %c0_20] : memref<8x128xf32, #tpu.memory_space<vmem>>, vector<8x128xf32>
    tpu.vector_store %arg8[%c0_19, %c0_20], %30 {strides = array<i32>} : memref<8x128xf32, #tpu.memory_space<vmem>>, vector<8x128xf32>,
    return
  }
  func.func @transform_0(%arg0: i32) -> (i32, i32) {
    %c0_i32 = arith.constant 0 : i32
    %c0_i32_0 = arith.constant 0 : i32
    return %arg0, %c0_i32 : i32, i32
  }
  func.func @transform_1(%arg0: i32) -> (i32, i32) {
    %c0_i32 = arith.constant 0 : i32
    %c0_i32_0 = arith.constant 0 : i32
    %c0_i32_1 = arith.constant 0 : i32
    return %c0_i32, %c0_i32_0 : i32, i32
  }
  func.func @transform_2(%arg0: i32) -> (i32, i32) {
    %c0_i32 = arith.constant 0 : i32
    %c0_i32_0 = arith.constant 0 : i32
    %c0_i32_1 = arith.constant 0 : i32
    return %c0_i32, %c0_i32_0 : i32, i32
  }
  func.func @transform_3(%arg0: i32) -> (i32, i32) {
    %c0_i32 = arith.constant 0 : i32
    %c0_i32_0 = arith.constant 0 : i32
    %c0_i32_1 = arith.constant 0 : i32
    return %c0_i32, %c0_i32_0 : i32, i32
  }
  func.func @transform_4(%arg0: i32) -> (i32, i32) {
    %c0_i32 = arith.constant 0 : i32
    %c0_i32_0 = arith.constant 0 : i32
    %c0_i32_1 = arith.constant 0 : i32
    return %c0_i32, %c0_i32_0 : i32, i32
  }
  func.func @transform_5(%arg0: i32) -> (i32, i32) {
    %c0_i32 = arith.constant 0 : i32
    %c0_i32_0 = arith.constant 0 : i32
    %c0_i32_1 = arith.constant 0 : i32
    return %c0_i32, %c0_i32_0 : i32, i32
  }
  func.func @transform_6(%arg0: i32) -> (i32, i32) {
    %c0_i32 = arith.constant 0 : i32
    %c0_i32_0 = arith.constant 0 : i32
    %c0_i32_1 = arith.constant 0 : i32
    return %c0_i32, %c0_i32_0 : i32, i32
  }
  func.func @transform_7(%arg0: i32) -> (i32, i32) {
    %c0_i32 = arith.constant 0 : i32
    %c0_i32_0 = arith.constant 0 : i32
    return %arg0, %c0_i32 : i32, i32
  }
}

</mosaic_0001>

<bundles_post_ra>
// kernel: _forward_impl.1
= control target key start
LH: loop header
LB: loop body
LE: loop exit
PB: predicated region body
PF: predicated region fallthrough
CT: control target
= control target key end

     0   :  { %12 = vsyncpa [#allocation3], 0  ;;  %s507_s0 = inlined_call_operand.hbm [shape: f32[8,16], index: 0, kind: input, shape index: {}]   ;;  %s508_s1 = inlined_call_operand.hbm [shape: bf16[16,32], index: 1, kind: input, shape index: {}]   ;;  %s509_s2 = inlined_call_operand.vmem [shape: f32[1,32], index: 2, kind: input, shape index: {}]   ;;  %s510_s3 = inlined_call_operand.hbm [shape: bf16[32,32], index: 3, kind: input, shape index: {}]   ;;  %s511_s4 = inlined_call_operand.vmem [shape: f32[1,32], index: 4, kind: input, shape index: {}]   ;;  %s512_s5 = inlined_call_operand.vmem [shape: bf16[32,128], index: 5, kind: input, shape index: {}]   ;;  %s513_s6 = inlined_call_operand.vmem [shape: f32[1,128], index: 6, kind: input, shape index: {}]   ;;  %s514_s7 = inlined_call_operand.vmem [shape: f32[8,128], index: 7, kind: output, shape index: {}]  }
   0x1   :  { %13 = vsyncpa [#allocation5], 0  ;;  %s400_s24 = smov [#allocation4]   ;;  %s330_s28 = scalar_lea.hbm %s508_s1, 128 }
   0x2   :  { %s29_s25 = sshll.u32 %s400_s24, 4  ;;  %p331_p0 = scmp.ne.s32.totalorder %s508_s1, %s330_s28  ;;  %s30_s25 = int_to_ptr.vmem [resolvable:$true] %s29_s25 }
   0x3   :  { %p334_p1 = scmp.lt.u32.totalorder %s330_s28, %s508_s1 }
   0x5   :  { %p336_p2 = pnand %p334_p1, %p331_p0 }
   0x7   :  { %339 = shalt.err (!%p336_p2)
}
   0x8   :  { %s340_s10 = scalar_lea.vmem %s30_s25, 128  ;;  %p345_p4 = scmp.lt.s32.totalorder %s30_s25, %s30_s25 }
   0x9   :  { %p341_p3 = scmp.ne.s32.totalorder %s30_s25, %s340_s10  ;;  %p346_p5 = scmp.lt.s32.totalorder %s340_s10, %s340_s10 }
   0xb   :  { %p347_p6 = por %p346_p5, %p345_p4 }
   0xd   :  { %p348_p7 = pnand %p347_p6, %p341_p3 }
   0xf   :  { %351 = shalt.err (!%p348_p7)
}
  0x10   :  { %s401_s11 = smov 64   ;;  %s402_s12 = smov 4  }
  0x11   :  { %35 = dma.hbm_to_vmem [thread:$0]  %s508_s1, 128, %s30_s25, [#allocation5], %s401_s11, %s401_s11, %s402_s12  }
  0x12   :  { %s403_s15 = smov [#allocation2]   ;;  %s404_s17 = smov [#allocation6]  }
  0x13   :  { %s20_s16 = sshll.u32 %s403_s15, 4  ;;  %s43_s18 = sshll.u32 %s404_s17, 4  ;;  %s21_s16 = int_to_ptr.vmem [resolvable:$true] %s20_s16  ;;  %s44_s18 = int_to_ptr.vmem [resolvable:$true] %s43_s18 }
  0x14   :  { %s352_s21 = scalar_lea.hbm %s507_s0, 128 }
  0x15   :  { %p353_p8 = scmp.ne.s32.totalorder %s507_s0, %s352_s21  ;;  %p356_p9 = scmp.lt.u32.totalorder %s352_s21, %s507_s0 }
  0x17   :  { %p358_p10 = pnand %p356_p9, %p353_p8 }
  0x19   :  { %361 = shalt.err (!%p358_p10)
}
  0x1a   :  { %s362_s1 = scalar_lea.vmem %s21_s16, 128  ;;  %p367_p12 = scmp.lt.s32.totalorder %s21_s16, %s21_s16 }
  0x1b   :  { %p363_p11 = scmp.ne.s32.totalorder %s21_s16, %s362_s1  ;;  %p368_p13 = scmp.lt.s32.totalorder %s362_s1, %s362_s1 }
  0x1d   :  { %p369_p0 = por %p368_p13, %p367_p12 }
  0x1f   :  { %p370_p1 = pnand %p369_p0, %p363_p11 }
  0x21   :  { %373 = shalt.err (!%p370_p1)
}
  0x22   :  { %23 = dma.hbm_to_vmem [thread:$0]  %s507_s0, 128, %s21_s16, [#allocation3]  }
  0x23   :  { %s374_s30 = scalar_lea.hbm %s510_s3, 256 }
  0x24   :  { %p375_p2 = scmp.ne.s32.totalorder %s510_s3, %s374_s30  ;;  %p378_p3 = scmp.lt.u32.totalorder %s374_s30, %s510_s3 }
  0x26   :  { %p380_p4 = pnand %p378_p3, %p375_p2 }
  0x28   :  { %383 = shalt.err (!%p380_p4)
}
  0x29   :  { %s384_s14 = scalar_lea.vmem %s44_s18, 256  ;;  %p389_p6 = scmp.lt.s32.totalorder %s44_s18, %s44_s18 }
  0x2a   :  { %p385_p5 = scmp.ne.s32.totalorder %s44_s18, %s384_s14  ;;  %p390_p7 = scmp.lt.s32.totalorder %s384_s14, %s384_s14 }
  0x2c   :  { %p391_p8 = por %p390_p7, %p389_p6 }
  0x2e   :  { %p392_p9 = pnand %p391_p8, %p385_p5 }
  0x30   :  { %395 = shalt.err (!%p392_p9)
}
  0x31   :  { %49 = dma.hbm_to_vmem [thread:$0]  %s510_s3, 256, %s44_s18, [#allocation5], %s401_s11, %s401_s11, %s402_s12  }
  0x32   :  { %396 = dma.done.wait [#allocation3], 128  }
  0x33   :  { %397 = vsyncadd [#allocation3], 4294967168 }
  0x34   :  { %398 = dma.done.wait [#allocation5], 384  }
  0x35   :  { %399 = vsyncadd [#allocation5], 4294966912  ;;  %v405_v0 = vmov 0.0   ;;  %vm406_vm0 = vmmov 0   ;;  %v325_v1 = vld [vmem:[#allocation4] sm:$0xff]   ;;  %v66_v2 = vld [vmem:[#allocation2] sm:$0xff]  ;;  %v264_v24 = vlaneseq }
  0x36   :  { %296 = vmatprep.subr.bf16.mxu0 %v405_v0  ;;  %298 = vmatprep.mubr.msk.bf16.mxu0 %vm406_vm0, %v405_v0  ;;  %vm83_vm1 = vcmask 130048   ;;  %v67_v3 = vpack.c.bf16 %v66_v2, %v66_v2  ;;  %v326_v4 = vld [vmem:[#allocation6] sm:$0xff]   ;;  %v327_v5 = vld [vmem:[#allocation6 + $0x8] sm:$0xff]   ;;  %v328_v6 = vld [vmem:[%s512_s5] sm:$0xff]   ;;  %vm152_vm2 = vcmask 261120  }
  0x37   :  { %302 = vmatprep.subr.bf16.mxu1 %v405_v0  ;;  %306 = vmatprep.mubr.msk.bf16.mxu1 %vm406_vm0, %v405_v0  ;;  %v277_v7 = vld [vmem:[%s509_s2] ss:$0 sm:$0xff]  ;;  %v329_v15 = vld [vmem:[%s512_s5 + $0x8] sm:$0xff]   ;;  %v265_v27 = vand.u32 127, %v264_v24 }
  0x38   :  { %297 = vmatpush3.bf16.msra.mxu0 %v325_v1  ;;  %303 = vmatpush3.bf16.msra.mxu1 %v326_v4  ;;  %v280_v16 = vld [vmem:[%s511_s4] ss:$0 sm:$0xff] }
  0x39   :  { %310 = vmatprep.subr.bf16.mxu0 %v405_v0  ;;  %304 = vmatprep.subr.bf16.mxu1 %v405_v0  ;;  %v284_v25 = vld [vmem:[%s513_s6] ss:$0 sm:$0xff]  ;;  %vm268_vm3 = vcmp.lt.s32.totalorder %v265_v27, 8 }
  0x3b   :  { %299 = vmatmul.mubr.msk.bf16.vlgmr.msra.gmra.mrb[0].mxu0 %vm83_vm1, %v67_v3 }
  0x3c   :  { %314 = vmatprep.mubr.msk.bf16.mxu0 %vm406_vm0, %v405_v0  ;;  %305 = vmatpush3.bf16.msra.mxu1 %v327_v5 }
  0x3d   :  { %311 = vmatpush3.bf16.msra.mxu0 %v328_v6 }
  0x3e   :  { %312 = vmatprep.subr.bf16.mxu0 %v405_v0 }
  0x41   :  { %313 = vmatpush3.bf16.msra.mxu0 %v329_v15 }
 0x10e   :  { %v121_v8 = vpop.f32.mrb[0].mxu0 }
 0x10f   :  { %v122_v9 = vadd.f32 %v277_v7, %v121_v8  ;;  %v300_v10 = vpop.f32.mrb[1].mxu0 }
 0x110   :  { %v124_v11 = vpop.f32.mrb[2].mxu0 }
 0x111   :  { %v127_v12 = vmax.f32 %v122_v9, 0.0  ;;  %v301_v13 = vpop.f32.mrb[3].mxu0 }
 0x113   :  { %v128_v14 = vpack.c.bf16 %v127_v12, %v127_v12 }
 0x115   :  { %307 = vmatmul.mubr.msk.bf16.vlgmr.msra.gmra.mrb[0].mxu1 %vm152_vm2, %v128_v14 }
 0x1e8   :  { %v190_v17 = vpop.f32.mrb[0].mxu1 }
 0x1e9   :  { %v191_v18 = vadd.f32 %v280_v16, %v190_v17  ;;  %v308_v19 = vpop.f32.mrb[1].mxu1 }
 0x1ea   :  { %v193_v20 = vpop.f32.mrb[2].mxu1 }
 0x1eb   :  { %v196_v21 = vmax.f32 %v191_v18, 0.0  ;;  %v309_v22 = vpop.f32.mrb[3].mxu1 }
 0x1ed   :  { %v197_v23 = vpack.c.bf16 %v196_v21, %v196_v21 }
 0x1ef   :  { %315 = vmatmul.mubr.msk.bf16.vlgmr.msra.gmra.mrb[4].mxu0 %vm152_vm2, %v197_v23 }
 0x2c2   :  { %v258_v26 = vpop.f32.mrb[4].mxu0 }
 0x2c3   :  { %v259_v28 = vadd.f32 %v284_v25, %v258_v26  ;;  %v316_v29 = vpop.f32.mrb[5].mxu0 }
 0x2c4   :  { %v261_v30 = vpop.f32.mrb[6].mxu0 }
 0x2c5   :  { %v266_v31 = vmax.f32 %v259_v28, -20.0  ;;  %v317_v32 = vpop.f32.mrb[7].mxu0 }
 0x2c7   :  { %v267_v33 = vmin.f32 %v266_v31, 2.0 }
 0x2c9   :  { %v269_v34 = vsel %vm268_vm3, %v259_v28, %v267_v33 }
 0x2ca   :  { %270 = vst [vmem:[%s514_s7] sm:$0xff] %v269_v34 }
 0x2cb   :  { %275 = vsyncpa [#allocation3], 1 }
 0x2cc   :  { %276 = vsyncpa [#allocation5], 1 }

</bundles_post_ra>
